<compile_context>
chip_gen: v6e
topology: v6e:2x2x1
jax: 0.10.0
libtpu: 0.0.40
codegen_flags: <defaults>
</compile_context>

<pallas_src>
import math

import jax
import jax.numpy as jnp
from jax.experimental import pallas as pl
from jax.experimental.pallas import tpu as pltpu

_TILE_BYTES = 2 * 1024 * 1024  # per-tile input bytes (pred + gold), v5e-safe


def _ceil_div(a, b):
    return -(-a // b)


def _round_up(x, m):
    return ((x + m - 1) // m) * m


def _round_down(x, m):
    return (x // m) * m


def _make_kernel(B, S, TB, TS, *, use_sigmoid, threshold, maskid, trueid,
                 mask_rows, mask_cols):
    """Per-tile kernel: (TB, TS) pred/gold blocks -> (TB, 1) per-example 0/1,
    AND-accumulated across the sequence grid axis directly in the output block."""

    def kernel(pred_ref, gold_ref, out_ref):
        s = pl.program_id(1)

        p = pred_ref[...]                              # native dtype (f32 or bf16)
        if use_sigmoid:
            # Degenerate threshold outside (0,1): keep exact sigmoid semantics.
            pred_bool = jax.nn.sigmoid(p.astype(jnp.float32)) > threshold
        else:
            # sigmoid folded into threshold (monotonic). Native-dtype compare:
            # bf16 pred compares against a bf16-rounded threshold (sub-ulp
            # boundary differences only; exact for threshold == 0.5).
            pred_bool = p > threshold

        g = gold_ref[...]                              # native integer dtype, no widen
        masked_out = g == maskid                       # ~mask
        realgold = g == trueid
        same = jnp.logical_or(pred_bool == realgold, masked_out)

        if mask_cols:
            # Ragged sequence edge: out-of-range columns must not poison the AND.
            col = s * TS + jax.lax.broadcasted_iota(jnp.int32, (TB, TS), 1)
            same = jnp.logical_or(same, col >= S)

        # "All positions correct" for this S-tile: min-reduce over the lane axis.
        ok = jnp.min(same.astype(jnp.float32), axis=1, keepdims=True)   # (TB, 1)

        if mask_rows:
            # Ragged batch edge: zero rows whose global index is >= B.
            row = pl.program_id(0) * TB + jax.lax.broadcasted_iota(jnp.int32, (TB, 1), 0)
            ok = ok * (row < B).astype(jnp.float32)

        @pl.when(s == 0)
        def _():
            out_ref[...] = ok                          # init on first S-tile

        @pl.when(s != 0)
        def _():
            out_ref[...] = out_ref[...] * ok           # AND across S-tiles

    return kernel


def automasked_binary_seq_accuracy(pred, gold, *, mode="logits", threshold=0.5,
                                    reduction="mean", maskid=0, trueid=2,
                                    block_rows=None, block_cols=None):
    """JAX/Pallas equivalent of AutomaskedBinarySeqAccuracy.forward.

    pred: (B, S) float logits/probs (f32 or bf16).  gold: (B, S) integer labels.
    block_rows / block_cols: optional tile-size overrides (testing / tuning).
    """
    B, S = pred.shape
    assert gold.shape == (B, S)

    # --- fold the sigmoid into the threshold (monotonicity) ------------------
    use_sigmoid = False
    thr = float(threshold)
    if mode == "logits":
        if 0.0 < thr < 1.0:
            thr = math.log(thr / (1.0 - thr))   # sigmoid(p) > t  <=>  p > logit(t)
        else:
            use_sigmoid = True                  # degenerate threshold: exact semantics

    # --- tile sizing by bytes -------------------------------------------------
    pb_, gb_ = pred.dtype.itemsize, gold.dtype.itemsize
    # sublane alignment for the block's second-to-last dim (covers packed dtypes)
    align = 8 * max(1, 4 // pb_, 4 // gb_)
    ebytes = pb_ + gb_

    # Sequence tile: full S if even a minimal (align-row) tile fits the budget,
    # otherwise the largest 128-multiple that does (=> S grid axis).
    if block_cols is not None:
        TS = int(block_cols)
        assert TS == S or TS % 128 == 0, "block_cols must equal S or be a multiple of 128"
    elif align * S * ebytes <= _TILE_BYTES:
        TS = S
    else:
        TS = max(128, _round_down(_TILE_BYTES // (align * ebytes), 128))
        TS = min(TS, _round_up(S, 128))
    ns = _ceil_div(S, TS)

    # Batch tile: as many rows as the byte budget allows (ragged grid, no pad).
    if block_rows is not None:
        TB = int(block_rows)
        assert TB == B or TB % align == 0, \
            f"block_rows must equal B or be a multiple of {align}"
    else:
        TB = max(align, _round_down(_TILE_BYTES // (TS * ebytes), align))
        if TB >= B:
            TB = B                              # full-batch block: always layout-legal
            if B >= 2 * align:                  # v7x: give both TensorCores work
                TB = _round_up(_ceil_div(B, 2), align)
    nb = _ceil_div(B, TB)
    B_out = nb * TB                             # out array sized so no OOB writes

    mask_rows = (B_out != B)
    mask_cols = (ns * TS != S)

    kernel = _make_kernel(B, S, TB, TS, use_sigmoid=use_sigmoid, threshold=thr,
                          maskid=int(maskid), trueid=int(trueid),
                          mask_rows=mask_rows, mask_cols=mask_cols)

    out = pl.pallas_call(
        kernel,
        out_shape=jax.ShapeDtypeStruct((B_out, 1), jnp.float32),
        grid=(nb, ns),
        in_specs=[pl.BlockSpec((TB, TS), lambda i, s: (i, s)),
                  pl.BlockSpec((TB, TS), lambda i, s: (i, s))],
        out_specs=pl.BlockSpec((TB, 1), lambda i, s: (i, 0)),
        compiler_params=pltpu.CompilerParams(
            dimension_semantics=("parallel", "arbitrary")),
        cost_estimate=pl.CostEstimate(
            flops=6 * B * S,
            transcendentals=(B * S if use_sigmoid else 0),
            bytes_accessed=pred.size * pb_ + gold.size * gb_ + B_out * 4),
    )(pred, gold)

    per_example = out[:B, 0]                    # (B,) per-example 0/1 accuracies
    if reduction == "sum":
        return jnp.sum(per_example)
    if reduction == "mean":
        return jnp.sum(per_example) / B
    return per_example                          # 'none'


def _reference(pred, gold, *, mode="logits", threshold=0.5, reduction="mean",
               maskid=0, trueid=2):
    p = pred.astype(jnp.float32)
    if mode == "logits":
        p = jax.nn.sigmoid(p)
    pb = p > threshold
    mask = gold != maskid
    rg = gold == trueid
    same = (pb == rg) | (~mask)
    cnt = jnp.sum(same.astype(jnp.int32), axis=1)
    ok = (cnt == gold.shape[1]).astype(jnp.float32)
    if reduction == "sum":
        return jnp.sum(ok)
    if reduction == "mean":
        return jnp.mean(ok)
    return ok


if __name__ == "__main__":
    key = jax.random.PRNGKey(0)
    kp, kg = jax.random.split(key)

    # 1) small single-tile path: B=8, S=16, f32 logits, int32 gold -------------
    B, S = 8, 16
    pred = jax.random.normal(kp, (B, S), dtype=jnp.float32)
    gold = jax.random.randint(kg, (B, S), 0, 3, dtype=jnp.int32)

    for red in ("mean", "sum", "none"):
        got = automasked_binary_seq_accuracy(pred, gold, reduction=red)
        jax.block_until_ready(got)
        assert jnp.allclose(got, _reference(pred, gold, reduction=red), atol=1e-6), red

    # 2) bf16 pred path (native bf16 compare, no widen) ------------------------
    got = automasked_binary_seq_accuracy(pred.astype(jnp.bfloat16), gold)
    jax.block_until_ready(got)
    ref_bf = _reference(pred.astype(jnp.bfloat16).astype(jnp.float32), gold)
    assert jnp.allclose(got, ref_bf, atol=1e-6)

    # 3) non-default / degenerate thresholds and probs mode --------------------
    got = automasked_binary_seq_accuracy(pred, gold, threshold=0.7)
    jax.block_until_ready(got)
    assert jnp.allclose(got, _reference(pred, gold, threshold=0.7), atol=1e-6)

    probs = jax.nn.sigmoid(pred)
    got = automasked_binary_seq_accuracy(probs, gold, mode="probs", threshold=0.5)
    jax.block_until_ready(got)
    assert jnp.allclose(got, _reference(probs, gold, mode="probs", threshold=0.5), atol=1e-6)

    got = automasked_binary_seq_accuracy(pred, gold, threshold=1.5)  # sigmoid fallback path
    jax.block_until_ready(got)
    assert jnp.allclose(got, _reference(pred, gold, threshold=1.5), atol=1e-6)

    # 4) ragged multi-tile batch (default sizing -> 2 parallel tiles; 128-row -> 3)
    kp2, kg2 = jax.random.split(jax.random.PRNGKey(1))
    B2, S2 = 300, 16
    pred2 = jax.random.normal(kp2, (B2, S2), dtype=jnp.float32)
    gold2 = jax.random.randint(kg2, (B2, S2), 0, 3, dtype=jnp.int32)
    for kw in ({}, {"block_rows": 128}):
        got_m = automasked_binary_seq_accuracy(pred2, gold2, reduction="mean", **kw)
        got_n = automasked_binary_seq_accuracy(pred2, gold2, reduction="none", **kw)
        jax.block_until_ready((got_m, got_n))
        assert jnp.allclose(got_m, _reference(pred2, gold2, reduction="mean"), atol=1e-6)
        assert jnp.allclose(got_n, _reference(pred2, gold2, reduction="none"), atol=1e-6)

    # 5) sequence-tiled ragged-S path (ns=2, AND-accumulation across S tiles) --
    kp3, kg3 = jax.random.split(jax.random.PRNGKey(2))
    B3, S3 = 16, 200
    pred3 = jax.random.normal(kp3, (B3, S3), dtype=jnp.float32)
    gold3 = jax.random.randint(kg3, (B3, S3), 0, 3, dtype=jnp.int32)
    got3 = automasked_binary_seq_accuracy(pred3, gold3, reduction="none", block_cols=128)
    jax.block_until_ready(got3)
    assert jnp.allclose(got3, _reference(pred3, gold3, reduction="none"), atol=1e-6)

    print("KERNEL_OK")
</pallas_src>

<mosaic_0001>
module attributes {stable_mosaic.version = 11 : i64} {
  func.func @kernel(%arg0: i32, %arg1: i32, %arg2: memref<8x16xf32, #tpu.memory_space<vmem>>, %arg3: memref<8x16xi32, #tpu.memory_space<vmem>>, %arg4: memref<8x1xf32, #tpu.memory_space<vmem>>) attributes {dimension_semantics = [#tpu.dimension_semantics<parallel>, #tpu.dimension_semantics<arbitrary>], iteration_bounds = array<i64: 1, 1>, scalar_prefetch = 0 : i64, scratch_operands = 0 : i64, tpu.core_type = #tpu.core_type<tc>, window_params = [{transform_indices = @transform_0, window_bounds = array<i64: 8, 16>}, {transform_indices = @transform_1, window_bounds = array<i64: 8, 16>}, {transform_indices = @transform_2, window_bounds = array<i64: 8, 1>}]} {
    %c0 = arith.constant 0 : index
    %c0_0 = arith.constant 0 : index
    %0 = vector.load %arg2[%c0, %c0_0] : memref<8x16xf32, #tpu.memory_space<vmem>>, vector<8x16xf32>
    %cst = arith.constant 0.000000e+00 : f32
    %1 = vector.broadcast %cst : f32 to vector<8x16xf32>
    %2 = arith.cmpf ogt, %0, %1 : vector<8x16xf32>
    %c0_1 = arith.constant 0 : index
    %c0_2 = arith.constant 0 : index
    %3 = vector.load %arg3[%c0_1, %c0_2] : memref<8x16xi32, #tpu.memory_space<vmem>>, vector<8x16xi32>
    %c0_i32 = arith.constant 0 : i32
    %4 = vector.broadcast %c0_i32 : i32 to vector<8x16xi32>
    %5 = arith.cmpi eq, %3, %4 : vector<8x16xi32>
    %c2_i32 = arith.constant 2 : i32
    %6 = vector.broadcast %c2_i32 : i32 to vector<8x16xi32>
    %7 = arith.cmpi eq, %3, %6 : vector<8x16xi32>
    %8 = arith.xori %2, %7 : vector<8x16xi1>
    %cst_3 = arith.constant dense<true> : vector<8x16xi1>
    %9 = arith.xori %8, %cst_3 : vector<8x16xi1>
    %10 = arith.ori %9, %5 : vector<8x16xi1>
    %11 = arith.extui %10 : vector<8x16xi1> to vector<8x16xi32>
    %12 = arith.sitofp %11 : vector<8x16xi32> to vector<8x16xf32>
    %cst_4 = arith.constant dense<0x7F800000> : vector<8xf32>
    %13 = vector.multi_reduction <minimumf>, %12, %cst_4 [1] : vector<8x16xf32> to vector<8xf32>
    %14 = vector.shape_cast %13 : vector<8xf32> to vector<8x1xf32>
    %c0_i32_5 = arith.constant 0 : i32
    %15 = arith.cmpi eq, %arg1, %c0_i32_5 : i32
    %16 = arith.extui %15 : i1 to i32
    %c0_i32_6 = arith.constant 0 : i32
    %17 = arith.cmpi ne, %16, %c0_i32_6 : i32
    scf.if %17 {
      %c0_9 = arith.constant 0 : index
      %c0_10 = arith.constant 0 : index
      %21 = vector.load %arg4[%c0_9, %c0_10] : memref<8x1xf32, #tpu.memory_space<vmem>>, vector<8x1xf32>
      tpu.vector_store %arg4[%c0_9, %c0_10], %14 {strides = array<i32>} : memref<8x1xf32, #tpu.memory_space<vmem>>, vector<8x1xf32>,
    } else {
    }
    %c0_i32_7 = arith.constant 0 : i32
    %18 = arith.cmpi ne, %arg1, %c0_i32_7 : i32
    %19 = arith.extui %18 : i1 to i32
    %c0_i32_8 = arith.constant 0 : i32
    %20 = arith.cmpi ne, %19, %c0_i32_8 : i32
    scf.if %20 {
      %c0_9 = arith.constant 0 : index
      %c0_10 = arith.constant 0 : index
      %21 = vector.load %arg4[%c0_9, %c0_10] : memref<8x1xf32, #tpu.memory_space<vmem>>, vector<8x1xf32>
      %22 = arith.mulf %21, %14 : vector<8x1xf32>
      %c0_11 = arith.constant 0 : index
      %c0_12 = arith.constant 0 : index
      %23 = vector.load %arg4[%c0_11, %c0_12] : memref<8x1xf32, #tpu.memory_space<vmem>>, vector<8x1xf32>
      tpu.vector_store %arg4[%c0_11, %c0_12], %22 {strides = array<i32>} : memref<8x1xf32, #tpu.memory_space<vmem>>, vector<8x1xf32>,
    } else {
    }
    return
  }
  func.func @transform_0(%arg0: i32, %arg1: i32) -> (i32, i32) {
    %c0_i32 = arith.constant 0 : i32
    return %arg0, %arg1 : i32, i32
  }
  func.func @transform_1(%arg0: i32, %arg1: i32) -> (i32, i32) {
    %c0_i32 = arith.constant 0 : i32
    return %arg0, %arg1 : i32, i32
  }
  func.func @transform_2(%arg0: i32, %arg1: i32) -> (i32, i32) {
    %c0_i32 = arith.constant 0 : i32
    %c0_i32_0 = arith.constant 0 : i32
    return %arg0, %c0_i32 : i32, i32
  }
}

</mosaic_0001>

<bundles_post_ra>
// kernel: tpu_custom_call.1
= control target key start
LH: loop header
LB: loop body
LE: loop exit
PB: predicated region body
PF: predicated region fallthrough
CT: control target
= control target key end

     0   :  { %7 = vsyncpa [#allocation3], 0  ;;  %s146_s0 = inlined_call_operand.hbm [shape: f32[8,16], index: 0, kind: input, shape index: {}]   ;;  %s147_s1 = inlined_call_operand.hbm [shape: s32[8,16], index: 1, kind: input, shape index: {}]   ;;  %s148_s2 = inlined_call_operand.vmem [shape: f32[8,1], index: 2, kind: output, shape index: {}]  }
   0x1   :  { %8 = vsyncpa [#allocation5], 0  ;;  %s118_s9 = smov [#allocation2]   ;;  %s119_s11 = smov [#allocation4]  }
   0x2   :  { %s15_s10 = sshll.u32 %s118_s9, 4  ;;  %s25_s12 = sshll.u32 %s119_s11, 4  ;;  %s16_s10 = int_to_ptr.vmem [resolvable:$true] %s15_s10  ;;  %s26_s12 = int_to_ptr.vmem [resolvable:$true] %s25_s12 }
   0x3   :  { %s82_s13 = scalar_lea.vmem %s16_s10, 128  ;;  %p87_p1 = scmp.lt.s32.totalorder %s16_s10, %s16_s10 }
   0x4   :  { %p83_p0 = scmp.ne.s32.totalorder %s16_s10, %s82_s13  ;;  %p88_p2 = scmp.lt.s32.totalorder %s82_s13, %s82_s13 }
   0x6   :  { %p89_p3 = por %p88_p2, %p87_p1 }
   0x8   :  { %p90_p4 = pnand %p89_p3, %p83_p0 }
   0xa   :  { %93 = shalt.err (!%p90_p4)
}
   0xb   :  { %18 = dma.hbm_to_vmem [thread:$0]  %s146_s0, 128, %s16_s10, [#allocation3]  }
   0xc   :  { %s102_s16 = scalar_lea.vmem %s26_s12, 128  ;;  %p107_p6 = scmp.lt.s32.totalorder %s26_s12, %s26_s12 }
   0xd   :  { %p103_p5 = scmp.ne.s32.totalorder %s26_s12, %s102_s16  ;;  %p108_p7 = scmp.lt.s32.totalorder %s102_s16, %s102_s16 }
   0xf   :  { %p109_p8 = por %p108_p7, %p107_p6 }
  0x11   :  { %p110_p9 = pnand %p109_p8, %p103_p5 }
  0x13   :  { %113 = shalt.err (!%p110_p9)
}
  0x14   :  { %28 = dma.hbm_to_vmem [thread:$0]  %s147_s1, 128, %s26_s12, [#allocation5]  }
  0x15   :  { %114 = dma.done.wait [#allocation3], 128  }
  0x16   :  { %115 = vsyncadd [#allocation3], 4294967168 }
  0x17   :  { %116 = dma.done.wait [#allocation5], 128  }
  0x18   :  { %117 = vsyncadd [#allocation5], 4294967168  ;;  %v35_v0 = vld [vmem:[#allocation2] sm:$0xff]  ;;  %v37_v1 = vld [vmem:[#allocation4] sm:$0xff]  ;;  %vm120_vm4 = vmmov 1   ;;  %vm45_vm6 = vcmask 130048  }
  0x19   :  { %vm36_vm0 = vcmp.gt.f32.partialorder %v35_v0, 0.0  ;;  %vm38_vm1 = vcmp.eq.s32.totalorder %v37_v1, 0  ;;  %vm39_vm2 = vcmp.eq.s32.totalorder %v37_v1, 2  ;;  %v121_v2 = vmov 0.0  }
  0x1a   :  { %vm40_vm3 = vmxor %vm36_vm0, %vm39_vm2  ;;  %vm53_vm8 = vcmask 7168  }
  0x1b   :  { %vm41_vm5 = vmxor %vm40_vm3, %vm120_vm4 }
  0x1c   :  { %vm42_vm7 = vmor %vm41_vm5, %vm38_vm1 }
  0x1d   :  { %v69_v3 = vsel %vm42_vm7, 1.0, %v121_v2 }
  0x1e   :  { %v46_v4 = vsel %vm45_vm6, %v69_v3, inf }
  0x1f   :  { %47 = vmin.xlane.f32.xlu0 %v46_v4 }
  0xa8   :  { %v48_v5 = vpop.xlane.xlu0 %47 }
  0xa9   :  { %54 = vst.msk [vmem:[%s148_s2] sm:$0xff] %vm53_vm8, %v48_v5 }
  0xaa   :  { %67 = vsyncpa [#allocation3], 1 }
  0xab   :  { %68 = vsyncpa [#allocation5], 1 }

</bundles_post_ra>
